<compile_context>
chip_gen: v6e
topology: v6e:2x2x1
jax: 0.10.0
libtpu: 0.0.40
codegen_flags: <defaults>
</compile_context>

<pallas_src>
import jax
import jax.numpy as jnp
from jax import lax
from jax.experimental import pallas as pl
from jax.experimental.pallas import tpu as pltpu  # noqa: F401  (kept for TPU-specific params if needed)

# ---------------- config (small, forward-implied shapes) ----------------
B = 2          # batch
S_DLG = 16     # dialogue encoder length
S_KB = 16      # kb-target encoder length
KB_NUM = 8     # number of kb triples
KB_TERM = 5    # raw kb term length (sliced [1:-1] -> 3 tokens per triple)
T = 8          # decoder length
E = 32         # embed_size
H = 32         # hidden_size
V = 128        # vocab size (src == tgt == kb == kbt, tied embedding)
PAD = 0        # padding_idx

M_DLG = S_DLG                      # copy-source widths in the concatenated scatter
M_KB = S_KB
M_KBT = KB_NUM
M_TOT = M_DLG + M_KB + M_KBT       # 40

LANE = 128
GATE_PAD = LANE                    # gate weight slab padded to a full lane width


# ============================ fused Pallas kernel ============================

def _decode_head_kernel(x_ref, dw_ref, ow_ref, gw_ref, mem_ref, mask_ref, idx_ref,
                        o_ref, g_ref):
    """Fully fused decode head of Seq2Seq.forward (single grid-less invocation).

    x_ref    : (B*T, E)      decoder token embeddings (batch folded into sublanes)
    dw_ref   : (E, H)        decoder projection (RNNDecoder stand-in)
    ow_ref   : (H, V)        generation head
    gw_ref   : (H, 128)      pre-padded gate weights (lanes 0/1/2 = gen/con/tcon)
    mem_ref  : (B, M_TOT, H) concatenated dlg/kb/kbt state memories
    mask_ref : (B, 1, M_TOT) additive attention mask (-1e9 at padded positions)
    idx_ref  : (B, M_TOT, 1) concatenated copy-source vocab indices (int32)
    o_ref    : (B*T, V)      log "logits" (log of mixed probability)
    g_ref    : (B*T, 128)    gate sigmoids, lane-dense (lanes 0/1/2 used)
    """
    Bn = mem_ref.shape[0]
    Mt = mem_ref.shape[1]
    Vv = ow_ref.shape[1]
    Tt = x_ref.shape[0] // Bn

    # Decoder hidden state (RNNDecoder stand-in): one (B*T,E)@(E,H) MXU matmul + tanh.
    h = jnp.tanh(jnp.dot(x_ref[...], dw_ref[...], preferred_element_type=jnp.float32))

    # Generation softmax over the lane-dense vocab axis.
    gen = jnp.dot(h, ow_ref[...], preferred_element_type=jnp.float32)        # (B*T, V)
    gen = gen - jnp.max(gen, axis=-1, keepdims=True)
    gen_e = jnp.exp(gen)                                                     # EUP
    prob = gen_e * pl.reciprocal(jnp.sum(gen_e, axis=-1, keepdims=True), approx=True)

    # All three gates: ONE matmul + ONE sigmoid over a lane-dense slab.
    z = jnp.dot(h, gw_ref[...], preferred_element_type=jnp.float32)          # (B*T, 128)
    gates = pl.reciprocal(1.0 + jnp.exp(-z), approx=True)
    g_ref[...] = gates                                                       # unmasked vst

    p_gen = gates[:, 0:1]
    p_con = gates[:, 1:2]
    pt_con = gates[:, 2:3]

    # Nested PyTorch gating expanded into per-source coefficients:
    #   logits = pt*kbt + (1-pt)*pc*kb + (1-pt)*(1-pc)*pg*prob + (1-pt)*(1-pc)*(1-pg)*dlg
    one_m_pt = 1.0 - pt_con
    c_kbt = pt_con
    c_kb = one_m_pt * p_con
    c_rest = one_m_pt * (1.0 - p_con)
    c_gen = c_rest * p_gen
    c_dlg = c_rest * (1.0 - p_gen)

    # Transposed one-hot iota (vocab on lanes), hoisted out of the unrolled batch loop.
    iota_v = lax.broadcasted_iota(jnp.int32, (Mt, Vv), 1)

    def seg_softmax(s):
        s = s - jnp.max(s, axis=-1, keepdims=True)
        e = jnp.exp(s)
        return e * pl.reciprocal(jnp.sum(e, axis=-1, keepdims=True), approx=True)

    rows_out = []
    for b in range(Bn):                    # B=2: static unroll replaces the old grid=(B,)
        rows = slice(b * Tt, (b + 1) * Tt)
        hb = h[rows, :]                                                      # (T, H)
        # attention scores vs concatenated copy-source memory: 'th,mh->tm'
        scores = lax.dot_general(hb, mem_ref[b], (((1,), (1,)), ((), ())),
                                 preferred_element_type=jnp.float32) + mask_ref[b]
        a_dlg = seg_softmax(scores[:, :M_DLG])
        a_kb = seg_softmax(scores[:, M_DLG:M_DLG + M_KB])
        a_kbt = seg_softmax(scores[:, M_DLG + M_KB:])
        # scale each segment by its gate coefficient, in-VMEM lane concat, then ONE
        # (T, M_TOT) x (M_TOT, V) MXU matmul replaces the three scatter_adds.
        scaled = jnp.concatenate([a_dlg * c_dlg[rows],
                                  a_kb * c_kb[rows],
                                  a_kbt * c_kbt[rows]], axis=-1)             # (T, M_TOT)
        onehot = (idx_ref[b] == iota_v).astype(jnp.float32)                  # (M_TOT, V)
        scat = jnp.dot(scaled, onehot, preferred_element_type=jnp.float32)   # (T, V)
        logits = c_gen[rows] * prob[rows, :] + scat
        rows_out.append(jnp.log(logits + 1e-12))

    o_ref[...] = jnp.concatenate(rows_out, axis=0)     # one lane-dense (B*T, V) store


def decode_head(dec_emb, dec_w, out_w, gates_w_pad, mem_cat, mask_add, idx_cat):
    """Wrapper for the fused decode-head kernel (single grid-less pallas_call)."""
    Bn, Tt, Ee = dec_emb.shape
    Vv = out_w.shape[1]
    Mt = mem_cat.shape[1]
    GP = gates_w_pad.shape[1]
    x2d = dec_emb.reshape(Bn * Tt, Ee).astype(jnp.float32)
    idx3 = idx_cat.reshape(Bn, Mt, 1).astype(jnp.int32)
    log_logits, gates = pl.pallas_call(
        _decode_head_kernel,
        out_shape=(jax.ShapeDtypeStruct((Bn * Tt, Vv), jnp.float32),
                   jax.ShapeDtypeStruct((Bn * Tt, GP), jnp.float32)),
    )(x2d, dec_w, out_w, gates_w_pad, mem_cat.astype(jnp.float32),
      mask_add.astype(jnp.float32), idx3)
    return log_logits.reshape(Bn, Tt, Vv), gates.reshape(Bn, Tt, GP)


# ============================ params / glue ============================

def init_params(key):
    ks = jax.random.split(key, 8)

    def nrm(k, shape, scale=0.05):
        return (scale * jax.random.normal(k, shape)).astype(jnp.float32)

    embed = nrm(ks[0], (V, E)).at[PAD].set(0.0)          # tied enc/dec/kb/kbt Embedder
    gate3 = nrm(ks[5], (H, 3))                           # [gen, con, tcon] gate vectors
    # pre-padded (H, 128) gate slab: stored padded once so the kernel gets a single
    # lane-dense DMA and no per-call pad ops.
    gates_w_pad = jnp.zeros((H, GATE_PAD), jnp.float32).at[:, :3].set(gate3)
    return dict(
        embedding=embed,
        trans_w=nrm(ks[1], (3 * E, H)),                  # trans_layer weight (pre-transposed)
        trans_b=jnp.zeros((1, H), jnp.float32),          # trans_layer bias
        enc_w=nrm(ks[2], (E, H)),                        # TODO(synk): stand-in for bert_encoder
        dec_w=nrm(ks[3], (E, H)),                        # TODO(synk): stand-in for RNNDecoder
        out_w=nrm(ks[4], (H, V)),                        # generation distribution head
        gates_w_pad=gates_w_pad,
        sel_w=nrm(ks[6], (H, H)),
    )


def seq2seq_forward(params, dlg_tokens, dlg_lengths, kb_tgt_tokens, kb_tgt_lengths,
                    kbt_tokens, kbt_lengths, dec_tokens):
    emb = params["embedding"]

    # ---- load_kb_memory ----
    kbt = kbt_tokens[:, :, 1:-1]                                     # (B, KB_NUM, 3)
    kbt_slot_index = kbt[:, :, -1]                                   # (B, KB_NUM)
    kbt_mask = (kbt_lengths == 0)                                    # (B, KB_NUM)
    selector_mask = jnp.logical_not(kbt_mask)
    embed_state = jnp.take(emb, kbt, axis=0).reshape(B, KB_NUM, 3 * E)
    # trans_layer left to XLA (per perf review: ~200 KFLOP linear; dispatch > compute)
    kbt_state_memory = embed_state @ params["trans_w"] + params["trans_b"]

    # ---- dlg_encode ----
    # TODO(synk): transformers_model (BERT encoder) is an undefined external module;
    # stand-in: embedding + tanh(Linear).
    dlg_emb = jnp.take(emb, dlg_tokens, axis=0)                      # (B, S_DLG, E)
    dlg_state_memory = jnp.tanh(dlg_emb @ params["enc_w"])           # (B, S_DLG, H)
    dlg_attn_mask = jnp.arange(S_DLG)[None, :] >= dlg_lengths[:, None]
    dlg_history_index = dlg_tokens

    # ---- kb_encode ----
    kb_emb = jnp.take(emb, kb_tgt_tokens, axis=0)
    kb_state_memory = jnp.tanh(kb_emb @ params["enc_w"])             # (B, S_KB, H)
    kb_attn_mask = jnp.arange(S_KB)[None, :] >= kb_tgt_lengths[:, None]
    kb_history_index = kb_tgt_tokens

    # decoder.initialize_kb selector stand-in
    enc_hidden = dlg_state_memory[:, -1, :]                          # (B, H)
    selector = jax.nn.sigmoid(
        jnp.einsum('bh,bkh->bk', enc_hidden @ params["sel_w"], kbt_state_memory))

    # ---- decoder inputs ----
    # TODO(synk): full RNNDecoder (multi-hop memory attention) is an undefined external
    # module; the stand-in decoder projection, attention distributions, generation
    # softmax and gates are computed inside the fused Pallas kernel.
    dec_emb = jnp.take(emb, dec_tokens, axis=0)                      # (B, T, E)

    # concatenated copy sources (pure layout ops): memories, additive masks, indices
    mem_cat = jnp.concatenate(
        [dlg_state_memory, kb_state_memory, kbt_state_memory], axis=1)   # (B, 40, H)
    mask_cat = jnp.concatenate([dlg_attn_mask, kb_attn_mask, kbt_mask], axis=-1)
    mask_add = jnp.where(mask_cat, -1e9, 0.0).astype(jnp.float32)[:, None, :]  # (B,1,40)
    idx_cat = jnp.concatenate(
        [dlg_history_index, kb_history_index, kbt_slot_index], axis=-1)  # (B, 40)

    # ---- fused decode head (single Pallas kernel) ----
    log_logits, gates = decode_head(dec_emb, params["dec_w"], params["out_w"],
                                    params["gates_w_pad"], mem_cat, mask_add, idx_cat)

    return dict(logits=log_logits,
                gate_logits=gates[..., 2],          # pt_con (lane 2 of the gate slab)
                selector_logits=selector,
                selector_mask=selector_mask,
                dlg_state_memory=dlg_state_memory,
                kbt_state_memory=kbt_state_memory)


# ============================ reference (sanity) ============================

def _ref_forward(params, dlg_tokens, dlg_lengths, kb_tgt_tokens, kb_tgt_lengths,
                 kbt_tokens, kbt_lengths, dec_tokens):
    """Plain-JAX reference using the original (sequential) PyTorch gating order."""
    emb = params["embedding"]
    kbt = kbt_tokens[:, :, 1:-1]
    kbt_slot_index = kbt[:, :, -1]
    kbt_mask = (kbt_lengths == 0)
    embed_state = jnp.take(emb, kbt, axis=0).reshape(B, KB_NUM, 3 * E)
    kbt_state_memory = embed_state @ params["trans_w"] + params["trans_b"]

    dlg_emb = jnp.take(emb, dlg_tokens, axis=0)
    dlg_state_memory = jnp.tanh(dlg_emb @ params["enc_w"])
    dlg_attn_mask = jnp.arange(S_DLG)[None, :] >= dlg_lengths[:, None]
    kb_emb = jnp.take(emb, kb_tgt_tokens, axis=0)
    kb_state_memory = jnp.tanh(kb_emb @ params["enc_w"])
    kb_attn_mask = jnp.arange(S_KB)[None, :] >= kb_tgt_lengths[:, None]

    dec_emb = jnp.take(emb, dec_tokens, axis=0)
    h = jnp.tanh(dec_emb @ params["dec_w"])
    prob = jax.nn.softmax(h @ params["out_w"], axis=-1)
    g = jax.nn.sigmoid(jnp.einsum('bth,hg->btg', h, params["gates_w_pad"][:, :3]))
    p_gen, p_con, pt_con = g[..., 0:1], g[..., 1:2], g[..., 2:3]

    def attn(mem, mask):
        s = jnp.einsum('bth,bmh->btm', h, mem)
        return jax.nn.softmax(jnp.where(mask[:, None, :], -1e9, s), axis=-1)

    def scat(a, idx):
        onehot = jax.nn.one_hot(idx, V, dtype=jnp.float32)
        return jnp.einsum('btm,bmv->btv', a, onehot)

    copy_logits = scat(attn(dlg_state_memory, dlg_attn_mask), dlg_tokens)
    kb_copy_logits = scat(attn(kb_state_memory, kb_attn_mask), kb_tgt_tokens)
    kbt_logits = scat(attn(kbt_state_memory, kbt_mask), kbt_slot_index)

    con = p_gen * prob + (1 - p_gen) * copy_logits
    kbl = p_con * kb_copy_logits + (1 - p_con) * con
    logits = pt_con * kbt_logits + (1 - pt_con) * kbl
    return jnp.log(logits + 1e-12), pt_con[..., 0]


# ============================ main ============================

if __name__ == "__main__":
    key = jax.random.PRNGKey(0)
    pk, dk1, dk2, dk3, dk4 = jax.random.split(key, 5)
    params = init_params(pk)

    dlg_tokens = jax.random.randint(dk1, (B, S_DLG), 1, V).astype(jnp.int32)
    dlg_lengths = jnp.array([S_DLG, S_DLG - 4], jnp.int32)
    kb_tgt_tokens = jax.random.randint(dk2, (B, S_KB), 1, V).astype(jnp.int32)
    kb_tgt_lengths = jnp.array([S_KB - 2, S_KB], jnp.int32)
    kbt_tokens = jax.random.randint(dk3, (B, KB_NUM, KB_TERM), 1, V).astype(jnp.int32)
    kbt_lengths = jnp.ones((B, KB_NUM), jnp.int32).at[1, -2:].set(0)
    dec_tokens = jax.random.randint(dk4, (B, T), 1, V).astype(jnp.int32)

    out = seq2seq_forward(params, dlg_tokens, dlg_lengths, kb_tgt_tokens,
                          kb_tgt_lengths, kbt_tokens, kbt_lengths, dec_tokens)
    jax.block_until_ready(out["logits"])
    assert out["logits"].shape == (B, T, V)
    assert out["gate_logits"].shape == (B, T)
    assert out["selector_logits"].shape == (B, KB_NUM)

    # -- sanity: fused Pallas head vs plain-JAX sequential-gating reference --
    # (approx=True reciprocals in the kernel -> loose-ish tolerance)
    ref_ll, ref_pt = _ref_forward(params, dlg_tokens, dlg_lengths, kb_tgt_tokens,
                                  kb_tgt_lengths, kbt_tokens, kbt_lengths, dec_tokens)
    jax.block_until_ready(ref_ll)
    assert jnp.allclose(out["gate_logits"], ref_pt, atol=1e-2, rtol=1e-2)
    assert jnp.allclose(out["logits"], ref_ll, atol=5e-2, rtol=5e-2)

    print("KERNEL_OK")
</pallas_src>

<mosaic_0001>
module attributes {stable_mosaic.version = 11 : i64} {
  func.func @_decode_head_kernel(%arg0: memref<16x32xf32, #tpu.memory_space<vmem>>, %arg1: memref<32x32xf32, #tpu.memory_space<vmem>>, %arg2: memref<32x128xf32, #tpu.memory_space<vmem>>, %arg3: memref<32x128xf32, #tpu.memory_space<vmem>>, %arg4: memref<2x40x32xf32, #tpu.memory_space<vmem>>, %arg5: memref<2x1x40xf32, #tpu.memory_space<vmem>>, %arg6: memref<2x40x1xi32, #tpu.memory_space<vmem>>, %arg7: memref<16x128xf32, #tpu.memory_space<vmem>>, %arg8: memref<16x128xf32, #tpu.memory_space<vmem>>) attributes {dimension_semantics = [], scalar_prefetch = 0 : i64, scratch_operands = 0 : i64, tpu.core_type = #tpu.core_type<tc>} {
    %c0 = arith.constant 0 : index
    %c0_0 = arith.constant 0 : index
    %0 = vector.load %arg0[%c0, %c0_0] : memref<16x32xf32, #tpu.memory_space<vmem>>, vector<16x32xf32>
    %c0_1 = arith.constant 0 : index
    %c0_2 = arith.constant 0 : index
    %1 = vector.load %arg1[%c0_1, %c0_2] : memref<32x32xf32, #tpu.memory_space<vmem>>, vector<32x32xf32>
    %cst = arith.constant dense<0.000000e+00> : vector<16x32xf32>
    %2 = tpu.matmul %0, %1, %cst {dimension_numbers = #tpu.dot_dimension_numbers<[1], [0], [0], [1], [0, 0, 1, 1], [], []>} : vector<16x32xf32>, vector<32x32xf32>, vector<16x32xf32> -> vector<16x32xf32>
    %3 = math.tanh %2 : vector<16x32xf32>
    %c0_3 = arith.constant 0 : index
    %c0_4 = arith.constant 0 : index
    %4 = vector.load %arg2[%c0_3, %c0_4] : memref<32x128xf32, #tpu.memory_space<vmem>>, vector<32x128xf32>
    %cst_5 = arith.constant dense<0.000000e+00> : vector<16x128xf32>
    %5 = tpu.matmul %3, %4, %cst_5 {dimension_numbers = #tpu.dot_dimension_numbers<[1], [0], [0], [1], [0, 0, 1, 1], [], []>} : vector<16x32xf32>, vector<32x128xf32>, vector<16x128xf32> -> vector<16x128xf32>
    %cst_6 = arith.constant dense<0xFF800000> : vector<16xf32>
    %6 = vector.multi_reduction <maximumf>, %5, %cst_6 [1] : vector<16x128xf32> to vector<16xf32>
    %7 = vector.shape_cast %6 : vector<16xf32> to vector<16x1xf32>
    %8 = vector.broadcast %7 : vector<16x1xf32> to vector<16x128xf32>
    %9 = arith.subf %5, %8 : vector<16x128xf32>
    %10 = math.exp %9 : vector<16x128xf32>
    %cst_7 = arith.constant dense<0.000000e+00> : vector<16xf32>
    %11 = vector.multi_reduction <add>, %10, %cst_7 [1] : vector<16x128xf32> to vector<16xf32>
    %12 = vector.shape_cast %11 : vector<16xf32> to vector<16x1xf32>
    %13 = tpu.reciprocal %12 {approx = true} : vector<16x1xf32> -> vector<16x1xf32>
    %14 = vector.broadcast %13 : vector<16x1xf32> to vector<16x128xf32>
    %15 = arith.mulf %10, %14 : vector<16x128xf32>
    %c0_8 = arith.constant 0 : index
    %c0_9 = arith.constant 0 : index
    %16 = vector.load %arg3[%c0_8, %c0_9] : memref<32x128xf32, #tpu.memory_space<vmem>>, vector<32x128xf32>
    %cst_10 = arith.constant dense<0.000000e+00> : vector<16x128xf32>
    %17 = tpu.matmul %3, %16, %cst_10 {dimension_numbers = #tpu.dot_dimension_numbers<[1], [0], [0], [1], [0, 0, 1, 1], [], []>} : vector<16x32xf32>, vector<32x128xf32>, vector<16x128xf32> -> vector<16x128xf32>
    %cst_11 = arith.constant 0.000000e+00 : f32
    %18 = vector.broadcast %cst_11 : f32 to vector<16x128xf32>
    %19 = arith.subf %18, %17 : vector<16x128xf32>
    %20 = math.exp %19 : vector<16x128xf32>
    %cst_12 = arith.constant 1.000000e+00 : f32
    %21 = vector.broadcast %cst_12 : f32 to vector<16x128xf32>
    %22 = arith.addf %21, %20 : vector<16x128xf32>
    %23 = tpu.reciprocal %22 {approx = true} : vector<16x128xf32> -> vector<16x128xf32>
    %c0_13 = arith.constant 0 : index
    %c0_14 = arith.constant 0 : index
    %24 = vector.load %arg8[%c0_13, %c0_14] : memref<16x128xf32, #tpu.memory_space<vmem>>, vector<16x128xf32>
    tpu.vector_store %arg8[%c0_13, %c0_14], %23 {strides = array<i32>} : memref<16x128xf32, #tpu.memory_space<vmem>>, vector<16x128xf32>,
    %25 = vector.extract_strided_slice %23 {offsets = [0, 0], sizes = [16, 1], strides = [1, 1]} : vector<16x128xf32> to vector<16x1xf32>
    %26 = vector.extract_strided_slice %23 {offsets = [0, 1], sizes = [16, 1], strides = [1, 1]} : vector<16x128xf32> to vector<16x1xf32>
    %27 = vector.extract_strided_slice %23 {offsets = [0, 2], sizes = [16, 1], strides = [1, 1]} : vector<16x128xf32> to vector<16x1xf32>
    %cst_15 = arith.constant 1.000000e+00 : f32
    %28 = vector.broadcast %cst_15 : f32 to vector<16x1xf32>
    %29 = arith.subf %28, %27 : vector<16x1xf32>
    %30 = arith.mulf %29, %26 : vector<16x1xf32>
    %cst_16 = arith.constant 1.000000e+00 : f32
    %31 = vector.broadcast %cst_16 : f32 to vector<16x1xf32>
    %32 = arith.subf %31, %26 : vector<16x1xf32>
    %33 = arith.mulf %29, %32 : vector<16x1xf32>
    %34 = arith.mulf %33, %25 : vector<16x1xf32>
    %cst_17 = arith.constant 1.000000e+00 : f32
    %35 = vector.broadcast %cst_17 : f32 to vector<16x1xf32>
    %36 = arith.subf %35, %25 : vector<16x1xf32>
    %37 = arith.mulf %33, %36 : vector<16x1xf32>
    %38 = tpu.iota {dimensions = array<i32: 1>} : vector<40x128xi32>
    %39 = vector.extract_strided_slice %3 {offsets = [0, 0], sizes = [8, 32], strides = [1, 1]} : vector<16x32xf32> to vector<8x32xf32>
    %c0_18 = arith.constant 0 : index
    %c0_19 = arith.constant 0 : index
    %c0_20 = arith.constant 0 : index
    %40 = vector.load %arg4[%c0_18, %c0_19, %c0_20] : memref<2x40x32xf32, #tpu.memory_space<vmem>>, vector<1x40x32xf32>
    %41 = vector.shape_cast %40 : vector<1x40x32xf32> to vector<40x32xf32>
    %cst_21 = arith.constant dense<0.000000e+00> : vector<8x40xf32>
    %42 = tpu.matmul %39, %41, %cst_21 {dimension_numbers = #tpu.dot_dimension_numbers<[1], [1], [0], [0], [0, 0, 1, 0], [], []>} : vector<8x32xf32>, vector<40x32xf32>, vector<8x40xf32> -> vector<8x40xf32>
    %c0_22 = arith.constant 0 : index
    %c0_23 = arith.constant 0 : index
    %c0_24 = arith.constant 0 : index
    %43 = vector.load %arg5[%c0_22, %c0_23, %c0_24] : memref<2x1x40xf32, #tpu.memory_space<vmem>>, vector<1x1x40xf32>
    %44 = vector.shape_cast %43 : vector<1x1x40xf32> to vector<1x40xf32>
    %45 = vector.broadcast %44 : vector<1x40xf32> to vector<8x40xf32>
    %46 = arith.addf %42, %45 : vector<8x40xf32>
    %47 = vector.extract_strided_slice %46 {offsets = [0, 0], sizes = [8, 16], strides = [1, 1]} : vector<8x40xf32> to vector<8x16xf32>
    %cst_25 = arith.constant dense<0xFF800000> : vector<8xf32>
    %48 = vector.multi_reduction <maximumf>, %47, %cst_25 [1] : vector<8x16xf32> to vector<8xf32>
    %49 = vector.shape_cast %48 : vector<8xf32> to vector<8x1xf32>
    %50 = vector.broadcast %49 : vector<8x1xf32> to vector<8x16xf32>
    %51 = arith.subf %47, %50 : vector<8x16xf32>
    %52 = math.exp %51 : vector<8x16xf32>
    %cst_26 = arith.constant dense<0.000000e+00> : vector<8xf32>
    %53 = vector.multi_reduction <add>, %52, %cst_26 [1] : vector<8x16xf32> to vector<8xf32>
    %54 = vector.shape_cast %53 : vector<8xf32> to vector<8x1xf32>
    %55 = tpu.reciprocal %54 {approx = true} : vector<8x1xf32> -> vector<8x1xf32>
    %56 = vector.broadcast %55 : vector<8x1xf32> to vector<8x16xf32>
    %57 = arith.mulf %52, %56 : vector<8x16xf32>
    %58 = vector.extract_strided_slice %46 {offsets = [0, 16], sizes = [8, 16], strides = [1, 1]} : vector<8x40xf32> to vector<8x16xf32>
    %cst_27 = arith.constant dense<0xFF800000> : vector<8xf32>
    %59 = vector.multi_reduction <maximumf>, %58, %cst_27 [1] : vector<8x16xf32> to vector<8xf32>
    %60 = vector.shape_cast %59 : vector<8xf32> to vector<8x1xf32>
    %61 = vector.broadcast %60 : vector<8x1xf32> to vector<8x16xf32>
    %62 = arith.subf %58, %61 : vector<8x16xf32>
    %63 = math.exp %62 : vector<8x16xf32>
    %cst_28 = arith.constant dense<0.000000e+00> : vector<8xf32>
    %64 = vector.multi_reduction <add>, %63, %cst_28 [1] : vector<8x16xf32> to vector<8xf32>
    %65 = vector.shape_cast %64 : vector<8xf32> to vector<8x1xf32>
    %66 = tpu.reciprocal %65 {approx = true} : vector<8x1xf32> -> vector<8x1xf32>
    %67 = vector.broadcast %66 : vector<8x1xf32> to vector<8x16xf32>
    %68 = arith.mulf %63, %67 : vector<8x16xf32>
    %69 = vector.extract_strided_slice %46 {offsets = [0, 32], sizes = [8, 8], strides = [1, 1]} : vector<8x40xf32> to vector<8x8xf32>
    %cst_29 = arith.constant dense<0xFF800000> : vector<8xf32>
    %70 = vector.multi_reduction <maximumf>, %69, %cst_29 [1] : vector<8x8xf32> to vector<8xf32>
    %71 = vector.shape_cast %70 : vector<8xf32> to vector<8x1xf32>
    %72 = vector.broadcast %71 : vector<8x1xf32> to vector<8x8xf32>
    %73 = arith.subf %69, %72 : vector<8x8xf32>
    %74 = math.exp %73 : vector<8x8xf32>
    %cst_30 = arith.constant dense<0.000000e+00> : vector<8xf32>
    %75 = vector.multi_reduction <add>, %74, %cst_30 [1] : vector<8x8xf32> to vector<8xf32>
    %76 = vector.shape_cast %75 : vector<8xf32> to vector<8x1xf32>
    %77 = tpu.reciprocal %76 {approx = true} : vector<8x1xf32> -> vector<8x1xf32>
    %78 = vector.broadcast %77 : vector<8x1xf32> to vector<8x8xf32>
    %79 = arith.mulf %74, %78 : vector<8x8xf32>
    %80 = vector.extract_strided_slice %37 {offsets = [0, 0], sizes = [8, 1], strides = [1, 1]} : vector<16x1xf32> to vector<8x1xf32>
    %81 = vector.broadcast %80 : vector<8x1xf32> to vector<8x16xf32>
    %82 = arith.mulf %57, %81 : vector<8x16xf32>
    %83 = vector.extract_strided_slice %30 {offsets = [0, 0], sizes = [8, 1], strides = [1, 1]} : vector<16x1xf32> to vector<8x1xf32>
    %84 = vector.broadcast %83 : vector<8x1xf32> to vector<8x16xf32>
    %85 = arith.mulf %68, %84 : vector<8x16xf32>
    %86 = vector.extract_strided_slice %27 {offsets = [0, 0], sizes = [8, 1], strides = [1, 1]} : vector<16x1xf32> to vector<8x1xf32>
    %87 = vector.broadcast %86 : vector<8x1xf32> to vector<8x8xf32>
    %88 = arith.mulf %79, %87 : vector<8x8xf32>
    %89 = tpu.concatenate %82, %85, %88 in 1 : vector<8x16xf32>, vector<8x16xf32>, vector<8x8xf32> -> vector<8x40xf32>
    %c0_31 = arith.constant 0 : index
    %c0_32 = arith.constant 0 : index
    %c0_33 = arith.constant 0 : index
    %90 = vector.load %arg6[%c0_31, %c0_32, %c0_33] : memref<2x40x1xi32, #tpu.memory_space<vmem>>, vector<1x40x1xi32>
    %91 = vector.shape_cast %90 : vector<1x40x1xi32> to vector<40x1xi32>
    %92 = vector.broadcast %91 : vector<40x1xi32> to vector<40x128xi32>
    %93 = arith.cmpi eq, %92, %38 : vector<40x128xi32>
    %94 = arith.extui %93 : vector<40x128xi1> to vector<40x128xi32>
    %95 = arith.sitofp %94 : vector<40x128xi32> to vector<40x128xf32>
    %cst_34 = arith.constant dense<0.000000e+00> : vector<8x128xf32>
    %96 = tpu.matmul %89, %95, %cst_34 {dimension_numbers = #tpu.dot_dimension_numbers<[1], [0], [0], [1], [0, 0, 1, 1], [], []>} : vector<8x40xf32>, vector<40x128xf32>, vector<8x128xf32> -> vector<8x128xf32>
    %97 = vector.extract_strided_slice %34 {offsets = [0, 0], sizes = [8, 1], strides = [1, 1]} : vector<16x1xf32> to vector<8x1xf32>
    %98 = vector.extract_strided_slice %15 {offsets = [0, 0], sizes = [8, 128], strides = [1, 1]} : vector<16x128xf32> to vector<8x128xf32>
    %99 = vector.broadcast %97 : vector<8x1xf32> to vector<8x128xf32>
    %100 = arith.mulf %99, %98 : vector<8x128xf32>
    %101 = arith.addf %100, %96 : vector<8x128xf32>
    %cst_35 = arith.constant 9.99999996E-13 : f32
    %102 = vector.broadcast %cst_35 : f32 to vector<8x128xf32>
    %103 = arith.addf %101, %102 : vector<8x128xf32>
    %104 = math.log %103 : vector<8x128xf32>
    %105 = vector.extract_strided_slice %3 {offsets = [8, 0], sizes = [8, 32], strides = [1, 1]} : vector<16x32xf32> to vector<8x32xf32>
    %c1 = arith.constant 1 : index
    %c0_36 = arith.constant 0 : index
    %c0_37 = arith.constant 0 : index
    %106 = vector.load %arg4[%c1, %c0_36, %c0_37] : memref<2x40x32xf32, #tpu.memory_space<vmem>>, vector<1x40x32xf32>
    %107 = vector.shape_cast %106 : vector<1x40x32xf32> to vector<40x32xf32>
    %cst_38 = arith.constant dense<0.000000e+00> : vector<8x40xf32>
    %108 = tpu.matmul %105, %107, %cst_38 {dimension_numbers = #tpu.dot_dimension_numbers<[1], [1], [0], [0], [0, 0, 1, 0], [], []>} : vector<8x32xf32>, vector<40x32xf32>, vector<8x40xf32> -> vector<8x40xf32>
    %c1_39 = arith.constant 1 : index
    %c0_40 = arith.constant 0 : index
    %c0_41 = arith.constant 0 : index
    %109 = vector.load %arg5[%c1_39, %c0_40, %c0_41] : memref<2x1x40xf32, #tpu.memory_space<vmem>>, vector<1x1x40xf32>
    %110 = vector.shape_cast %109 : vector<1x1x40xf32> to vector<1x40xf32>
    %111 = vector.broadcast %110 : vector<1x40xf32> to vector<8x40xf32>
    %112 = arith.addf %108, %111 : vector<8x40xf32>
    %113 = vector.extract_strided_slice %112 {offsets = [0, 0], sizes = [8, 16], strides = [1, 1]} : vector<8x40xf32> to vector<8x16xf32>
    %cst_42 = arith.constant dense<0xFF800000> : vector<8xf32>
    %114 = vector.multi_reduction <maximumf>, %113, %cst_42 [1] : vector<8x16xf32> to vector<8xf32>
    %115 = vector.shape_cast %114 : vector<8xf32> to vector<8x1xf32>
    %116 = vector.broadcast %115 : vector<8x1xf32> to vector<8x16xf32>
    %117 = arith.subf %113, %116 : vector<8x16xf32>
    %118 = math.exp %117 : vector<8x16xf32>
    %cst_43 = arith.constant dense<0.000000e+00> : vector<8xf32>
    %119 = vector.multi_reduction <add>, %118, %cst_43 [1] : vector<8x16xf32> to vector<8xf32>
    %120 = vector.shape_cast %119 : vector<8xf32> to vector<8x1xf32>
    %121 = tpu.reciprocal %120 {approx = true} : vector<8x1xf32> -> vector<8x1xf32>
    %122 = vector.broadcast %121 : vector<8x1xf32> to vector<8x16xf32>
    %123 = arith.mulf %118, %122 : vector<8x16xf32>
    %124 = vector.extract_strided_slice %112 {offsets = [0, 16], sizes = [8, 16], strides = [1, 1]} : vector<8x40xf32> to vector<8x16xf32>
    %cst_44 = arith.constant dense<0xFF800000> : vector<8xf32>
    %125 = vector.multi_reduction <maximumf>, %124, %cst_44 [1] : vector<8x16xf32> to vector<8xf32>
    %126 = vector.shape_cast %125 : vector<8xf32> to vector<8x1xf32>
    %127 = vector.broadcast %126 : vector<8x1xf32> to vector<8x16xf32>
    %128 = arith.subf %124, %127 : vector<8x16xf32>
    %129 = math.exp %128 : vector<8x16xf32>
    %cst_45 = arith.constant dense<0.000000e+00> : vector<8xf32>
    %130 = vector.multi_reduction <add>, %129, %cst_45 [1] : vector<8x16xf32> to vector<8xf32>
    %131 = vector.shape_cast %130 : vector<8xf32> to vector<8x1xf32>
    %132 = tpu.reciprocal %131 {approx = true} : vector<8x1xf32> -> vector<8x1xf32>
    %133 = vector.broadcast %132 : vector<8x1xf32> to vector<8x16xf32>
    %134 = arith.mulf %129, %133 : vector<8x16xf32>
    %135 = vector.extract_strided_slice %112 {offsets = [0, 32], sizes = [8, 8], strides = [1, 1]} : vector<8x40xf32> to vector<8x8xf32>
    %cst_46 = arith.constant dense<0xFF800000> : vector<8xf32>
    %136 = vector.multi_reduction <maximumf>, %135, %cst_46 [1] : vector<8x8xf32> to vector<8xf32>
    %137 = vector.shape_cast %136 : vector<8xf32> to vector<8x1xf32>
    %138 = vector.broadcast %137 : vector<8x1xf32> to vector<8x8xf32>
    %139 = arith.subf %135, %138 : vector<8x8xf32>
    %140 = math.exp %139 : vector<8x8xf32>
    %cst_47 = arith.constant dense<0.000000e+00> : vector<8xf32>
    %141 = vector.multi_reduction <add>, %140, %cst_47 [1] : vector<8x8xf32> to vector<8xf32>
    %142 = vector.shape_cast %141 : vector<8xf32> to vector<8x1xf32>
    %143 = tpu.reciprocal %142 {approx = true} : vector<8x1xf32> -> vector<8x1xf32>
    %144 = vector.broadcast %143 : vector<8x1xf32> to vector<8x8xf32>
    %145 = arith.mulf %140, %144 : vector<8x8xf32>
    %146 = vector.extract_strided_slice %37 {offsets = [8, 0], sizes = [8, 1], strides = [1, 1]} : vector<16x1xf32> to vector<8x1xf32>
    %147 = vector.broadcast %146 : vector<8x1xf32> to vector<8x16xf32>
    %148 = arith.mulf %123, %147 : vector<8x16xf32>
    %149 = vector.extract_strided_slice %30 {offsets = [8, 0], sizes = [8, 1], strides = [1, 1]} : vector<16x1xf32> to vector<8x1xf32>
    %150 = vector.broadcast %149 : vector<8x1xf32> to vector<8x16xf32>
    %151 = arith.mulf %134, %150 : vector<8x16xf32>
    %152 = vector.extract_strided_slice %27 {offsets = [8, 0], sizes = [8, 1], strides = [1, 1]} : vector<16x1xf32> to vector<8x1xf32>
    %153 = vector.broadcast %152 : vector<8x1xf32> to vector<8x8xf32>
    %154 = arith.mulf %145, %153 : vector<8x8xf32>
    %155 = tpu.concatenate %148, %151, %154 in 1 : vector<8x16xf32>, vector<8x16xf32>, vector<8x8xf32> -> vector<8x40xf32>
    %c1_48 = arith.constant 1 : index
    %c0_49 = arith.constant 0 : index
    %c0_50 = arith.constant 0 : index
    %156 = vector.load %arg6[%c1_48, %c0_49, %c0_50] : memref<2x40x1xi32, #tpu.memory_space<vmem>>, vector<1x40x1xi32>
    %157 = vector.shape_cast %156 : vector<1x40x1xi32> to vector<40x1xi32>
    %158 = vector.broadcast %157 : vector<40x1xi32> to vector<40x128xi32>
    %159 = arith.cmpi eq, %158, %38 : vector<40x128xi32>
    %160 = arith.extui %159 : vector<40x128xi1> to vector<40x128xi32>
    %161 = arith.sitofp %160 : vector<40x128xi32> to vector<40x128xf32>
    %cst_51 = arith.constant dense<0.000000e+00> : vector<8x128xf32>
    %162 = tpu.matmul %155, %161, %cst_51 {dimension_numbers = #tpu.dot_dimension_numbers<[1], [0], [0], [1], [0, 0, 1, 1], [], []>} : vector<8x40xf32>, vector<40x128xf32>, vector<8x128xf32> -> vector<8x128xf32>
    %163 = vector.extract_strided_slice %34 {offsets = [8, 0], sizes = [8, 1], strides = [1, 1]} : vector<16x1xf32> to vector<8x1xf32>
    %164 = vector.extract_strided_slice %15 {offsets = [8, 0], sizes = [8, 128], strides = [1, 1]} : vector<16x128xf32> to vector<8x128xf32>
    %165 = vector.broadcast %163 : vector<8x1xf32> to vector<8x128xf32>
    %166 = arith.mulf %165, %164 : vector<8x128xf32>
    %167 = arith.addf %166, %162 : vector<8x128xf32>
    %cst_52 = arith.constant 9.99999996E-13 : f32
    %168 = vector.broadcast %cst_52 : f32 to vector<8x128xf32>
    %169 = arith.addf %167, %168 : vector<8x128xf32>
    %170 = math.log %169 : vector<8x128xf32>
    %171 = tpu.concatenate %104, %170 in 0 : vector<8x128xf32>, vector<8x128xf32> -> vector<16x128xf32>
    %c0_53 = arith.constant 0 : index
    %c0_54 = arith.constant 0 : index
    %172 = vector.load %arg7[%c0_53, %c0_54] : memref<16x128xf32, #tpu.memory_space<vmem>>, vector<16x128xf32>
    tpu.vector_store %arg7[%c0_53, %c0_54], %171 {strides = array<i32>} : memref<16x128xf32, #tpu.memory_space<vmem>>, vector<16x128xf32>,
    return
  }
}

</mosaic_0001>

<bundles_post_ra>
// kernel: tpu_custom_call.1
= control target key start
LH: loop header
LB: loop body
LE: loop exit
PB: predicated region body
PF: predicated region fallthrough
CT: control target
= control target key end

     0   :  { %14 = vsyncpa [#allocation3], 0  ;;  %vm36_vm0 = vcmask 261120   ;;  %s1581_s0 = inlined_call_operand.vmem [shape: f32[16,32], index: 0, kind: input, shape index: {}]   ;;  %s1582_s1 = inlined_call_operand.vmem [shape: f32[32,32], index: 1, kind: input, shape index: {}]   ;;  %s1583_s2 = inlined_call_operand.vmem [shape: f32[32,128], index: 2, kind: input, shape index: {}]   ;;  %s1584_s3 = inlined_call_operand.vmem [shape: f32[32,128], index: 3, kind: input, shape index: {}]   ;;  %s1585_s4 = inlined_call_operand.vmem [shape: f32[2,40,32], index: 4, kind: input, shape index: {}]   ;;  %s1586_s5 = inlined_call_operand.vmem [shape: f32[2,1,40], index: 5, kind: input, shape index: {}]   ;;  %s1587_s6 = inlined_call_operand.vmem [shape: s32[2,40,1], index: 6, kind: input, shape index: {}]   ;;  %s1588_s7 = inlined_call_operand.hbm [shape: f32[16,128], index: 7, kind: output, shape index: {0}]   ;;  %s1589_s8 = inlined_call_operand.hbm [shape: f32[16,128], index: 8, kind: output, shape index: {1}]  }
   0x1   :  { %v35_v0 = vld [vmem:[%s1582_s1 + $0x18] sm:$0xff]  ;;  %v34_v1 = vld [vmem:[%s1582_s1 + $0x10] sm:$0xff]  ;;  %v30_v2 = vld [vmem:[%s1581_s0] sm:$0xff] }
   0x2   :  { %1041 = vmatprep.subr.mxu0 %v35_v0  ;;  %v33_v3 = vld [vmem:[%s1582_s1 + $0x8] sm:$0xff]  ;;  %1049 = vmatprep.mubr.msk.f32.mxu0 %vm36_vm0, %v30_v2 }
   0x3   :  { %1042 = vmatpush3.msra.mxu0 %v35_v0 }
   0x4   :  { %15 = vsyncpa [#allocation5], 0  ;;  %1043 = vmatprep.subr.mxu0 %v34_v1  ;;  %v32_v4 = vld [vmem:[%s1582_s1] sm:$0xff]  ;;  %v31_v5 = vld [vmem:[%s1581_s0 + $0x8] sm:$0xff]  ;;  %v1239_v14 = vmov 0.0   ;;  %vm1240_vm1 = vmmov 0  }
   0x5   :  { %1044 = vmatpush3.msra.mxu0 %v34_v1  ;;  %v123_v6 = vld [vmem:[%s1583_s2 + $0x18] sm:$0xff]  ;;  %v122_v8 = vld [vmem:[%s1583_s2 + $0x10] sm:$0xff]  ;;  %v121_v10 = vld [vmem:[%s1583_s2 + $0x8] sm:$0xff]  ;;  %vm463_vm2 = vcmask 261248   ;;  %vm451_vm3 = vcmask 130048   ;;  %vm479_vm4 = vcmask 326912  }
   0x6   :  { %1045 = vmatprep.subr.mxu0 %v33_v3  ;;  %v226_v7 = vld [vmem:[%s1584_s3 + $0x18] sm:$0xff]  ;;  %1052 = vmatprep.subr.mxu1 %v123_v6  ;;  %v225_v9 = vld [vmem:[%s1584_s3 + $0x10] sm:$0xff]  ;;  %v224_v11 = vld [vmem:[%s1584_s3 + $0x8] sm:$0xff]  ;;  %s1241_s19 = smov 112   ;;  %v1242_v52 = vmov 0   ;;  %s1243_s20 = smov 96  }
   0x7   :  { %1046 = vmatpush3.msra.mxu0 %v33_v3  ;;  %1053 = vmatpush3.msra.mxu1 %v123_v6  ;;  %v120_v12 = vld [vmem:[%s1583_s2] sm:$0xff]  ;;  %v357_v20 = vld [vmem:[%s1585_s4 + $0x18] sm:$0xff]  ;;  %v356_v21 = vld [vmem:[%s1585_s4 + $0x10] sm:$0xff]  ;;  %s1244_s21 = smov 1   ;;  %s1245_s1 = smov 2   ;;  %vm490_vm5 = vcmask 64512  }
   0x8   :  { %1047 = vmatprep.subr.mxu0 %v32_v4  ;;  %1054 = vmatprep.subr.mxu1 %v122_v8  ;;  %v223_v13 = vld [vmem:[%s1584_s3] sm:$0xff]  ;;  %v355_v22 = vld [vmem:[%s1585_s4 + $0x8] sm:$0xff]  ;;  %v518_v1 = vld [vmem:[%s1587_s6 + $0x18] sm:$0xff]  ;;  %vm550_vm10 = vcmask 326656  }
   0x9   :  { %1048 = vmatpush3.msra.mxu0 %v32_v4  ;;  %1055 = vmatpush3.msra.mxu1 %v122_v8  ;;  %v358_v18 = vld [vmem:[%s1585_s4 + $0x20] sm:$0xff]  ;;  %v517_v2 = vld [vmem:[%s1587_s6 + $0x10] sm:$0xff]  ;;  %v516_v4 = vld [vmem:[%s1587_s6 + $0x8] sm:$0xff] }
   0xa   :  { %1050 = vmatmul.mubr.msk.f32.vlgmr.msra.gmra.mxu0 %vm36_vm0, %v31_v5  ;;  %1063 = vmatprep.subr.mxu0 %v226_v7  ;;  %v354_v23 = vld [vmem:[%s1585_s4] sm:$0xff] }
   0xb   :  { %1064 = vmatpush3.msra.mxu0 %v226_v7  ;;  %1056 = vmatprep.subr.mxu1 %v121_v10  ;;  %v952_v33 = vld [vmem:[%s1586_s5] ss:$0 sm:$0xff] }
   0xc   :  { %1065 = vmatprep.subr.mxu0 %v225_v9  ;;  %1057 = vmatpush3.msra.mxu1 %v121_v10  ;;  %v519_v5 = vld [vmem:[%s1587_s6 + $0x20] sm:$0xff] }
   0xd   :  { %1066 = vmatpush3.msra.mxu0 %v225_v9  ;;  %1058 = vmatprep.subr.mxu1 %v120_v12  ;;  %v1246_v9 = vmov 2  }
   0xe   :  { %1067 = vmatprep.subr.mxu0 %v224_v11  ;;  %1059 = vmatpush3.msra.mxu1 %v120_v12 }
   0xf   :  { %1068 = vmatpush3.msra.mxu0 %v224_v11  ;;  %1074 = vmatprep.subr.mxu1 %v1239_v14  ;;  %v515_v11 = vld [vmem:[%s1587_s6] sm:$0xff] }
  0x10   :  { %1069 = vmatprep.subr.mxu0 %v223_v13  ;;  %1139 = vset.pattern.permute.xlu0 %v1242_v52 }
  0x11   :  { %1070 = vmatpush3.msra.mxu0 %v223_v13  ;;  %1140 = vset.pattern.permute.xlu1 %v1242_v52 }
  0x12   :  { %1087 = vmatprep.subr.mxu0 %v1239_v14 }
  0xca   :  { %v1051_v15 = vpop.f32.mrf.mxu0 }
  0xcc   :  { %v109_v16 = vpop.f32.mrf.mxu0 }
  0xcd   :  { %1147 = vtanh.f32 %v109_v16 }
  0xce   :  { %1149 = vtanh.f32 %v1051_v15 }
  0xda   :  { %v1148_v17 = vpop.eup %1147 }
  0xdb   :  { %v1346_v19 = vpop.eup %1149  ;;  %1060 = vmatprep.mubr.msk.f32.mxu1 %vm36_vm0, %v1148_v17  ;;  %1071 = vmatprep.mubr.msk.f32.mxu0 %vm36_vm0, %v1148_v17 }
  0xdc   :  { %1061 = vmatmul.mubr.msk.f32.vlgmr.msra.gmra.mxu1 %vm36_vm0, %v1346_v19  ;;  %1072 = vmatmul.mubr.msk.f32.vlgmr.msra.gmra.mxu0 %vm36_vm0, %v1346_v19 }
  0xdd   :  { %1075 = vmatpush3.xpose.msk.msra.mxu1 %vm36_vm0, %v358_v18  ;;  %1084 = vmatprep.mubr.msk.f32.mxu1 %vm1240_vm1, %v1239_v14 }
  0xde   :  { %1076 = vmatprep.subr.mxu1 %v1239_v14  ;;  %1097 = vmatprep.mubr.msk.f32.mxu0 %vm1240_vm1, %v1239_v14 }
  0xe1   :  { %1077 = vmatpush3.xpose.msk.msra.mxu1 %vm36_vm0, %v357_v20 }
  0xe2   :  { %1078 = vmatprep.subr.mxu1 %v1239_v14 }
  0xe5   :  { %1079 = vmatpush3.xpose.msk.msra.mxu1 %vm36_vm0, %v356_v21 }
  0xe6   :  { %1080 = vmatprep.subr.mxu1 %v1239_v14 }
  0xe9   :  { %1081 = vmatpush3.xpose.msk.msra.mxu1 %vm36_vm0, %v355_v22 }
  0xea   :  { %1082 = vmatprep.subr.mxu1 %v1239_v14 }
  0xed   :  { %1083 = vmatpush3.xpose.msk.msra.mxu1 %vm36_vm0, %v354_v23  ;;  %v1247_v23 = vmov 1.0  }
  0xee   :  { %1113 = vmatprep.subr.mxu1 %v1239_v14 }
  0xf0   :  { %1085 = vmatmul.mubr.msk.f32.vlgmr.msra.gmra.mxu1 %vm36_vm0, %v1148_v17  ;;  %v352_v17 = vlaneseq }
  0xf1   :  { %1123 = vmatprep.mubr.msk.f32.mxu1 %vm1240_vm1, %v1239_v14 }
  0xf2   :  { %v1441_v20 = vand.u32 127, %v352_v17  ;;  %v984_v17 = vld [vmem:[%s1587_s6 + $0x30] sm:$0xff] }
 0x19c   :  { %v1073_v24 = vpop.f32.mrf.mxu0  ;;  %v1383_v30 = vpop.f32.mrf.mxu1 }
 0x19d   :  { %v303_v25 = vsub.f32 0.0, %v1073_v24 }
 0x19e   :  { %v293_v26 = vpop.f32.mrf.mxu0  ;;  %v1385_v32 = vpop.f32.mrf.mxu1 }
 0x19f   :  { %v306_v27 = vmul.f32 1.442695, %v303_v25  ;;  %v302_v28 = vsub.f32 0.0, %v293_v26 }
 0x1a1   :  { %1151 = vpow2.f32 %v306_v27  ;;  %v304_v29 = vmul.f32 1.442695, %v302_v28 }
 0x1a3   :  { %1153 = vpow2.f32 %v304_v29 }
 0x1ae   :  { %v1152_v31 = vpop.eup %1151 }
 0x1af   :  { %v309_v34 = vadd.f32 1.0, %v1152_v31 }
 0x1b0   :  { %v1154_v35 = vpop.eup %1153  ;;  %v447_v36 = vpop.f32.mrf.mxu1 }
 0x1b1   :  { %1155 = vrcp.f32 %v309_v34  ;;  %v308_v37 = vadd.f32 1.0, %v1154_v35  ;;  %v448_v38 = vadd.f32 %v952_v33, %v447_v36 }
 0x1b2   :  { %v1086_v39 = vpop.f32.mrf.mxu1 }
 0x1b3   :  { %1157 = vrcp.f32 %v308_v37  ;;  %v464_v40 = vsel %vm463_vm2, %v448_v38, -inf  ;;  %v452_v41 = vsel %vm451_vm3, %v448_v38, -inf  ;;  %v480_v42 = vsel %vm479_vm4, %v448_v38, -inf }
 0x1b4   :  { %465 = vmax.xlane.f32.xlu0 %v464_v40  ;;  %453 = vmax.xlane.f32.xlu1 %v452_v41  ;;  %v974_v40 = vld [vmem:[%s1585_s4 + $0x48] sm:$0xff] }
 0x1b8   :  { %481 = vmax.xlane.f32.xlu0 %v480_v42  ;;  %v973_v42 = vld [vmem:[%s1585_s4 + $0x40] sm:$0xff] }
 0x1be   :  { %v1393_v43 = vpop.eup %1155 }
 0x1bf   :  { %313 = vst [vmem:[#allocation4 + $0x8] sm:$0xff] %v1393_v43 }
 0x1c0   :  { %v1396_v44 = vpop.eup %1157 }
 0x1c1   :  { %312 = vst [vmem:[#allocation4] sm:$0xff] %v1396_v44  ;;  %v314_v53 = vsub.f32 1.0, %v1396_v44 }
 0x23d   :  { %v466_v45 = vpop.xlane.xlu0 %465  ;;  %v454_v55 = vpop.xlane.xlu1 %453 }
 0x23e   :  { %v467_v46 = vsub.f32 %v448_v38, %v466_v45  ;;  %v455_v56 = vsub.f32 %v448_v38, %v454_v55  ;;  %v972_v45 = vld [vmem:[%s1585_s4 + $0x38] sm:$0xff] }
 0x240   :  { %v468_v47 = vmul.f32 1.442695, %v467_v46  ;;  %v456_v57 = vmul.f32 1.442695, %v455_v56  ;;  %v971_v46 = vld [vmem:[%s1585_s4 + $0x30] sm:$0xff] }
 0x241   :  { %v482_v48 = vpop.xlane.xlu0 %481 }
 0x242   :  { %1159 = vpow2.f32 %v468_v47  ;;  %v483_v49 = vsub.f32 %v448_v38, %v482_v48  ;;  %v970_v47 = vld [vmem:[%s1585_s4 + $0x28] sm:$0xff] }
 0x244   :  { %v484_v50 = vmul.f32 1.442695, %v483_v49 }
 0x246   :  { %1161 = vpow2.f32 %v484_v50  ;;  %v976_v50 = vld [vmem:[%s1586_s5 + $0x1] ss:$0 sm:$0xff] }
 0x247   :  { %1163 = vpow2.f32 %v456_v57 }
 0x24f   :  { %v1399_v51 = vpop.eup %1159 }
 0x250   :  { %471 = vrot.lane.b32.xlu1 %v1399_v51, %s1241_s19 }
 0x253   :  { %v1406_v54 = vpop.eup %1161 }
 0x254   :  { %487 = vrot.lane.b32.xlu0 %v1406_v54, %s1243_s20  ;;  %328 = vrot.lane.b32.xlu1 %v314_v53, %s1244_s21  ;;  %v1414_v58 = vpop.eup %1163 }
 0x255   :  { %v458_v59 = vsel %vm451_vm3, %v1414_v58, 0.0 }
 0x258   :  { %318 = vrot.lane.b32.xlu1 %v1396_v44, %s1244_s21 }
 0x25c   :  { %344 = vrot.lane.b32.xlu1 %v314_v53, %s1245_s1 }
 0x273   :  { %459 = vadd.xlane.f32.xlu0 %v458_v59 }
 0x2c2   :  { %v472_v60 = vpop.permute.xlu1 %471 }
 0x2c3   :  { %v474_v61 = vsel %vm451_vm3, %v472_v60, 0.0 }
 0x2c4   :  { %475 = vadd.xlane.f32.xlu1 %v474_v61 }
 0x2c6   :  { %v488_v62 = vpop.permute.xlu0 %487  ;;  %v329_v0 = vpop.permute.xlu1 %328 }
 0x2c7   :  { %v491_v63 = vsel %vm490_vm5, %v488_v62, 0.0  ;;  %v1432_v7 = vmul.f32 %v329_v0, %v314_v53 }
 0x2c8   :  { %492 = vadd.xlane.f32.xlu0 %v491_v63 }
 0x2ca   :  { %v319_v3 = vpop.permute.xlu1 %318 }
 0x2cb   :  { %v324_v10 = vmul.f32 %v319_v3, %v314_v53  ;;  %v986_v3 = vld [vmem:[%s1587_s6 + $0x40] sm:$0xff] }
 0x2ce   :  { %v345_v6 = vpop.permute.xlu1 %344 }
 0x2cf   :  { %v350_v8 = vmul.f32 %v345_v6, %v1432_v7 }
 0x2d5   :  { %530 = vperm.xlu1 %1140, %v518_v1   ;;  %v315_v1 = vsub.f32 1.0, %v1393_v43 }
 0x2d9   :  { %527 = vperm.xlu1 %1140, %v517_v2   ;;  %v987_v2 = vld [vmem:[%s1587_s6 + $0x48] sm:$0xff] }
 0x2dd   :  { %524 = vperm.xlu1 %1140, %v516_v4   ;;  %v985_v4 = vld [vmem:[%s1587_s6 + $0x38] sm:$0xff] }
 0x2de   :  { %533 = vperm.xlu0 %1139, %v519_v5  }
 0x2e1   :  { %1141 = vset.pattern.permute.xlu1 %v1246_v9 }
 0x2e2   :  { %498 = vperm.xlu1 %1141, %v350_v8  }
 0x2e6   :  { %504 = vperm.xlu1 %1141, %v324_v10  }
 0x2ea   :  { %509 = vperm.xlu1 %1141, %v1396_v44  }
 0x2ee   :  { %1142 = vset.pattern.permute.xlu1 %v1242_v52 }
 0x2ef   :  { %521 = vperm.xlu1 %1142, %v515_v11  }
 0x2fc   :  { %v460_v13 = vpop.xlane.xlu0 %459 }
 0x34d   :  { %v476_v12 = vpop.xlane.xlu1 %475 }
 0x34e   :  { %1165 = vrcp.f32 %v476_v12 }
 0x351   :  { %v531_v15 = vpop.permute.xlu1 %530  ;;  %v493_v16 = vpop.xlane.xlu0 %492 }
 0x352   :  { %1167 = vrcp.f32 %v493_v16  ;;  %vm538_vm7 = vcmp.eq.s32.totalorder %v531_v15, %v1441_v20 }
 0x353   :  { %1169 = vrcp.f32 %v460_v13 }
 0x355   :  { %v528_v18 = vpop.permute.xlu1 %527 }
 0x356   :  { %vm537_vm8 = vcmp.eq.s32.totalorder %v528_v18, %v1441_v20 }
 0x359   :  { %v534_v21 = vpop.permute.xlu0 %533  ;;  %v525_v22 = vpop.permute.xlu1 %524 }
 0x35a   :  { %vm539_vm6 = vcmp.eq.s32.totalorder %v534_v21, %v1441_v20  ;;  %vm536_vm9 = vcmp.eq.s32.totalorder %v525_v22, %v1441_v20 }
 0x35b   :  { %1088 = vmatpush3.msk.msra.mxu0 %vm539_vm6, %v1247_v23  ;;  %v1166_v26 = vpop.eup %1165 }
 0x35c   :  { %1089 = vmatprep.subr.mxu0 %v1239_v14  ;;  %v478_v29 = vmul.f32 %v1166_v26, %v1399_v51 }
 0x35d   :  { %1090 = vmatpush3.msk.msra.mxu0 %vm538_vm7, %v1247_v23  ;;  %v499_v24 = vpop.permute.xlu1 %498 }
 0x35e   :  { %1091 = vmatprep.subr.mxu0 %v1239_v14 }
 0x35f   :  { %1092 = vmatpush3.msk.msra.mxu0 %vm537_vm8, %v1247_v23  ;;  %v1168_v27 = vpop.eup %1167 }
 0x360   :  { %1093 = vmatprep.subr.mxu0 %v1239_v14  ;;  %v1170_v28 = vpop.eup %1169  ;;  %v495_v33 = vmul.f32 %v1168_v27, %v1406_v54 }
 0x361   :  { %1094 = vmatpush3.msk.msra.mxu0 %vm536_vm9, %v1247_v23  ;;  %v505_v25 = vpop.permute.xlu1 %504  ;;  %v462_v34 = vmul.f32 %v1170_v28, %v1414_v58 }
 0x362   :  { %1095 = vmatprep.subr.mxu0 %v1239_v14  ;;  %v507_v35 = vmul.f32 %v505_v25, %v478_v29  ;;  %v983_v29 = vld [vmem:[%s1587_s6 + $0x28] sm:$0xff]  ;;  %s1248_s6 = smov [#allocation4]  }
 0x363   :  { %v501_v37 = vmul.f32 %v499_v24, %v462_v34 }
 0x365   :  { %v510_v31 = vpop.permute.xlu1 %509  ;;  %v513_v39 = vsel %vm451_vm3, %v501_v37, %v507_v35 }
 0x366   :  { %v512_v36 = vmul.f32 %v510_v31, %v495_v33 }
 0x368   :  { %v514_v41 = vsel %vm36_vm0, %v513_v39, %v512_v36 }
 0x36a   :  { %v522_v38 = vpop.permute.xlu1 %521 }
 0x36b   :  { %vm535_vm11 = vcmp.eq.s32.totalorder %v522_v38, %v1441_v20 }
 0x36c   :  { %1096 = vmatpush3.msk.msra.mxu0 %vm535_vm11, %v1247_v23 }
 0x36d   :  { %1098 = vmatmul.mubr.msk.f32.vlgmr.msra.gmra.mxu0 %vm550_vm10, %v514_v41  ;;  %1100 = vmatprep.subr.mxu0 %v1239_v14 }
 0x36e   :  { %1101 = vmatpush3.xpose.msk.msra.mxu0 %vm36_vm0, %v974_v40  ;;  %1110 = vmatprep.mubr.msk.f32.mxu0 %vm1240_vm1, %v1239_v14 }
 0x36f   :  { %1102 = vmatprep.subr.mxu0 %v1239_v14 }
 0x372   :  { %1103 = vmatpush3.xpose.msk.msra.mxu0 %vm36_vm0, %v973_v42 }
 0x373   :  { %1104 = vmatprep.subr.mxu0 %v1239_v14 }
 0x376   :  { %1105 = vmatpush3.xpose.msk.msra.mxu0 %vm36_vm0, %v972_v45 }
 0x377   :  { %1106 = vmatprep.subr.mxu0 %v1239_v14 }
 0x37a   :  { %1107 = vmatpush3.xpose.msk.msra.mxu0 %vm36_vm0, %v971_v46 }
 0x37b   :  { %1108 = vmatprep.subr.mxu0 %v1239_v14 }
 0x37e   :  { %1109 = vmatpush3.xpose.msk.msra.mxu0 %vm36_vm0, %v970_v47 }
 0x381   :  { %1111 = vmatmul.mubr.msk.f32.vlgmr.msra.gmra.mxu0 %vm36_vm0, %v1346_v19 }
 0x42d   :  { %v1492_v48 = vpop.f32.mrf.mxu0 }
 0x42f   :  { %v1099_v49 = vpop.f32.mrf.mxu0 }
 0x441   :  { %v729_v51 = vpop.f32.mrf.mxu0 }
 0x442   :  { %v730_v53 = vadd.f32 %v976_v50, %v729_v51 }
 0x443   :  { %v1112_v54 = vpop.f32.mrf.mxu0 }
 0x444   :  { %v759_v55 = vsel %vm479_vm4, %v730_v53, -inf  ;;  %v744_v56 = vsel %vm463_vm2, %v730_v53, -inf  ;;  %v733_v57 = vsel %vm451_vm3, %v730_v53, -inf }
 0x445   :  { %760 = vmax.xlane.f32.xlu1 %v759_v55  ;;  %745 = vmax.xlane.f32.xlu0 %v744_v56 }
 0x449   :  { %734 = vmax.xlane.f32.xlu0 %v733_v57 }
 0x4ce   :  { %v761_v19 = vpop.xlane.xlu1 %760  ;;  %v746_v58 = vpop.xlane.xlu0 %745 }
 0x4cf   :  { %v762_v59 = vsub.f32 %v730_v53, %v761_v19  ;;  %v747_v60 = vsub.f32 %v730_v53, %v746_v58 }
 0x4d1   :  { %v763_v61 = vmul.f32 1.442695, %v762_v59  ;;  %v748_v62 = vmul.f32 1.442695, %v747_v60 }
 0x4d2   :  { %v735_v5 = vpop.xlane.xlu0 %734 }
 0x4d3   :  { %1171 = vpow2.f32 %v763_v61  ;;  %v736_v18 = vsub.f32 %v730_v53, %v735_v5 }
 0x4d4   :  { %1173 = vpow2.f32 %v748_v62 }
 0x4d5   :  { %v737_v22 = vmul.f32 1.442695, %v736_v18 }
 0x4d7   :  { %1175 = vpow2.f32 %v737_v22 }
 0x4e0   :  { %v1500_v63 = vpop.eup %1171 }
 0x4e1   :  { %v1502_v0 = vpop.eup %1173  ;;  %766 = vrot.lane.b32.xlu1 %v1500_v63, %s1243_s20 }
 0x4e2   :  { %751 = vrot.lane.b32.xlu0 %v1502_v0, %s1241_s19 }
 0x4e5   :  { %330 = vrot.lane.b32.xlu1 %v315_v1, %s1244_s21 }
 0x4e6   :  { %320 = vrot.lane.b32.xlu0 %v1393_v43, %s1244_s21 }
 0x4e9   :  { %346 = vrot.lane.b32.xlu1 %v315_v1, %s1245_s1 }
 0x4ea   :  { %812 = vperm.xlu0 %1139, %v987_v2  }
 0x4ed   :  { %809 = vperm.xlu1 %1142, %v986_v3  }
 0x4ee   :  { %1143 = vset.pattern.permute.xlu0 %v1246_v9 }
 0x4f1   :  { %806 = vperm.xlu1 %1142, %v985_v4  }
 0x4f5   :  { %1144 = vset.pattern.permute.xlu1 %v1246_v9 }
 0x553   :  { %v767_v6 = vpop.permute.xlu1 %766 }
 0x554   :  { %v752_v8 = vpop.permute.xlu0 %751  ;;  %v769_v27 = vsel %vm490_vm5, %v767_v6, 0.0 }
 0x555   :  { %v754_v28 = vsel %vm451_vm3, %v752_v8, 0.0 }
 0x557   :  { %v331_v10 = vpop.permute.xlu1 %330 }
 0x558   :  { %v321_v11 = vpop.permute.xlu0 %320  ;;  %v1524_v13 = vmul.f32 %v331_v10, %v315_v1 }
 0x559   :  { %v325_v12 = vmul.f32 %v321_v11, %v315_v1 }
 0x55b   :  { %782 = vperm.xlu1 %1144, %v325_v12   ;;  %v347_v15 = vpop.permute.xlu1 %346 }
 0x55c   :  { %v351_v16 = vmul.f32 %v347_v15, %v1524_v13 }
 0x55e   :  { %776 = vperm.xlu0 %1143, %v351_v16  }
 0x55f   :  { %1145 = vset.pattern.permute.xlu1 %v1242_v52  ;;  %v1176_v52 = vpop.eup %1175 }
 0x560   :  { %803 = vperm.xlu1 %1145, %v984_v17   ;;  %v739_v26 = vsel %vm451_vm3, %v1176_v52, 0.0 }
 0x565   :  { %v813_v21 = vpop.permute.xlu0 %812 }
 0x566   :  { %vm818_vm12 = vcmp.eq.s32.totalorder %v813_v21, %v1441_v20 }
 0x567   :  { %1114 = vmatpush3.msk.msra.mxu1 %vm818_vm12, %v1247_v23 }
 0x568   :  { %v810_v24 = vpop.permute.xlu1 %809  ;;  %1115 = vmatprep.subr.mxu1 %v1239_v14 }
 0x569   :  { %vm817_vm13 = vcmp.eq.s32.totalorder %v810_v24, %v1441_v20 }
 0x56a   :  { %1116 = vmatpush3.msk.msra.mxu1 %vm817_vm13, %v1247_v23 }
 0x56b   :  { %1117 = vmatprep.subr.mxu1 %v1239_v14 }
 0x56c   :  { %v807_v25 = vpop.permute.xlu1 %806 }
 0x56d   :  { %vm816_vm14 = vcmp.eq.s32.totalorder %v807_v25, %v1441_v20 }
 0x56e   :  { %1118 = vmatpush3.msk.msra.mxu1 %vm816_vm14, %v1247_v23 }
 0x56f   :  { %1119 = vmatprep.subr.mxu1 %v1239_v14 }
 0x57d   :  { %740 = vadd.xlane.f32.xlu0 %v739_v26 }
 0x581   :  { %770 = vadd.xlane.f32.xlu0 %v769_v27 }
 0x584   :  { %755 = vadd.xlane.f32.xlu1 %v754_v28 }
 0x595   :  { %800 = vperm.xlu1 %1145, %v983_v29  }
 0x597   :  { %787 = vperm.xlu0 %1143, %v1393_v43  }
 0x599   :  { %1146 = vset.pattern.permute.xlu1 %v1246_v9 }
 0x5b6   :  { %205 = vmax.xlane.f32.xlu0 %v1385_v32 }
 0x5b9   :  { %207 = vmax.xlane.f32.xlu1 %v1383_v30 }
 0x5ca   :  { %338 = vrot.lane.b32.xlu1 %v1393_v43, %s1245_s1 }
 0x5cc   :  { %336 = vrot.lane.b32.xlu0 %v1396_v44, %s1245_s1  ;;  %s931_s1 = sshll.u32 %s1248_s6, 4  ;;  %s932_s1 = int_to_ptr.vmem [resolvable:$true] %s931_s1 }
 0x5cd   :  { %s1195_s26 = scalar_lea.vmem %s932_s1, 256  ;;  %p1200_p1 = scmp.lt.s32.totalorder %s932_s1, %s932_s1 }
 0x5ce   :  { %p1196_p0 = scmp.ne.s32.totalorder %s932_s1, %s1195_s26  ;;  %p1201_p2 = scmp.lt.s32.totalorder %s1195_s26, %s1195_s26 }
 0x5d0   :  { %p1202_p3 = por %p1201_p2, %p1200_p1 }
 0x5d2   :  { %p1203_p4 = pnand %p1202_p3, %p1196_p0 }
 0x5d6   :  { %v783_v31 = vpop.permute.xlu1 %782 }
 0x5d9   :  { %v777_v34 = vpop.permute.xlu0 %776 }
 0x5db   :  { %v804_v33 = vpop.permute.xlu1 %803 }
 0x5dc   :  { %vm815_vm15 = vcmp.eq.s32.totalorder %v804_v33, %v1441_v20 }
 0x5dd   :  { %1120 = vmatpush3.msk.msra.mxu1 %vm815_vm15, %v1247_v23 }
 0x5de   :  { %1121 = vmatprep.subr.mxu1 %v1239_v14 }
 0x606   :  { %v741_v9 = vpop.xlane.xlu0 %740 }
 0x607   :  { %1177 = vrcp.f32 %v741_v9 }
 0x60a   :  { %v771_v35 = vpop.xlane.xlu0 %770 }
 0x60b   :  { %1179 = vrcp.f32 %v771_v35 }
 0x60d   :  { %v756_v36 = vpop.xlane.xlu1 %755 }
 0x60e   :  { %1181 = vrcp.f32 %v756_v36 }
 0x611   :  { %v801_v37 = vpop.permute.xlu1 %800 }
 0x612   :  { %vm814_vm1 = vcmp.eq.s32.totalorder %v801_v37, %v1441_v20  ;;  %v788_v45 = vpop.permute.xlu0 %787 }
 0x613   :  { %1122 = vmatpush3.msk.msra.mxu1 %vm814_vm1, %v1247_v23 }
 0x614   :  { %v1178_v43 = vpop.eup %1177 }
 0x615   :  { %v743_v38 = vmul.f32 %v1178_v43, %v1176_v52 }
 0x617   :  { %v779_v41 = vmul.f32 %v777_v34, %v743_v38 }
 0x618   :  { %v1180_v44 = vpop.eup %1179 }
 0x619   :  { %v773_v40 = vmul.f32 %v1180_v44, %v1500_v63 }
 0x61b   :  { %v1182_v39 = vpop.eup %1181  ;;  %v790_v46 = vmul.f32 %v788_v45, %v773_v40 }
 0x61c   :  { %v758_v14 = vmul.f32 %v1182_v39, %v1502_v0 }
 0x61e   :  { %v785_v42 = vmul.f32 %v783_v31, %v758_v14 }
 0x620   :  { %v791_v47 = vsel %vm451_vm3, %v779_v41, %v785_v42 }
 0x621   :  { %v792_v49 = vsel %vm36_vm0, %v791_v47, %v790_v46 }
 0x622   :  { %1124 = vmatmul.mubr.msk.f32.vlgmr.msra.gmra.mxu1 %vm550_vm10, %v792_v49 }
 0x63f   :  { %v206_v20 = vpop.xlane.xlu0 %205 }
 0x640   :  { %v209_v23 = vsub.f32 %v1385_v32, %v206_v20 }
 0x642   :  { %v211_v50 = vmul.f32 1.442695, %v209_v23  ;;  %v208_v51 = vpop.xlane.xlu1 %207 }
 0x643   :  { %v210_v53 = vsub.f32 %v1383_v30, %v208_v51  ;;  %v337_v19 = vpop.permute.xlu0 %336 }
 0x644   :  { %1183 = vpow2.f32 %v211_v50  ;;  %v342_v59 = vmul.f32 %v337_v19, %v1432_v7 }
 0x645   :  { %v213_v54 = vmul.f32 1.442695, %v210_v53 }
 0x646   :  { %v339_v57 = vpop.permute.xlu1 %338 }
 0x647   :  { %1185 = vpow2.f32 %v213_v54  ;;  %v343_v58 = vmul.f32 %v339_v57, %v1524_v13 }
 0x651   :  { %v1184_v55 = vpop.eup %1183 }
 0x652   :  { %215 = vadd.xlane.f32.xlu0 %v1184_v55 }
 0x654   :  { %v1186_v56 = vpop.eup %1185 }
 0x655   :  { %217 = vadd.xlane.f32.xlu1 %v1186_v56 }
 0x666   :  { %904 = vperm.xlu1 %1146, %v343_v58  }
 0x668   :  { %626 = vperm.xlu0 %1143, %v342_v59  }
 0x669   :  { %1206 = shalt.err (!%p1203_p4)
}
 0x66a   :  { %s1249_s27 = smov 128   ;;  %s1250_s28 = smov 8  }
 0x66b   :  { %937 = dma.vmem_to_hbm [thread:$0]  %s932_s1, 256, %s1589_s8, [#allocation5], %s1249_s27, %s1249_s27, %s1250_s28  }
 0x66c   :  { %s1251_s8 = smov [#allocation2]  }
 0x66d   :  { %s919_s2 = sshll.u32 %s1251_s8, 4  ;;  %s920_s2 = int_to_ptr.vmem [resolvable:$true] %s919_s2 }
 0x66e   :  { %s1215_s3 = scalar_lea.vmem %s920_s2, 256  ;;  %p1220_p6 = scmp.lt.s32.totalorder %s920_s2, %s920_s2 }
 0x66f   :  { %p1216_p5 = scmp.ne.s32.totalorder %s920_s2, %s1215_s3  ;;  %p1221_p7 = scmp.lt.s32.totalorder %s1215_s3, %s1215_s3 }
 0x671   :  { %p1222_p8 = por %p1221_p7, %p1220_p6 }
 0x673   :  { %p1223_p9 = pnand %p1222_p8, %p1216_p5 }
 0x6db   :  { %v216_v30 = vpop.xlane.xlu0 %215 }
 0x6dc   :  { %1187 = vrcp.f32 %v216_v30 }
 0x6de   :  { %v218_v32 = vpop.xlane.xlu1 %217 }
 0x6df   :  { %1189 = vrcp.f32 %v218_v32 }
 0x6e2   :  { %v898_v7 = vpop.f32.mrf.mxu1  ;;  %v905_v3 = vpop.permute.xlu1 %904 }
 0x6e3   :  { %v627_v63 = vpop.permute.xlu0 %626 }
 0x6e4   :  { %v1125_v60 = vpop.f32.mrf.mxu1 }
 0x6e9   :  { %v1188_v61 = vpop.eup %1187 }
 0x6ea   :  { %v221_v62 = vmul.f32 %v1188_v61, %v1184_v55 }
 0x6ec   :  { %v1190_v0 = vpop.eup %1189  ;;  %v629_v1 = vmul.f32 %v627_v63, %v221_v62 }
 0x6ed   :  { %v222_v2 = vmul.f32 %v1190_v0, %v1186_v56 }
 0x6ee   :  { %v630_v4 = vadd.f32 %v629_v1, %v1492_v48 }
 0x6ef   :  { %v907_v5 = vmul.f32 %v905_v3, %v222_v2 }
 0x6f0   :  { %v631_v6 = vadd.f32 1e-12, %v630_v4 }
 0x6f1   :  { %v908_v8 = vadd.f32 %v907_v5, %v898_v7 }
 0x6f2   :  { %1191 = vlog2.f32 %v631_v6 }
 0x6f3   :  { %v909_v10 = vadd.f32 1e-12, %v908_v8 }
 0x6f5   :  { %1193 = vlog2.f32 %v909_v10 }
 0x6ff   :  { %v1192_v11 = vpop.eup %1191 }
 0x700   :  { %v633_v12 = vmul.f32 0.6931472, %v1192_v11 }
 0x702   :  { %v1194_v13 = vpop.eup %1193  ;;  %912 = vst [vmem:[#allocation2] sm:$0xff] %v633_v12 }
 0x703   :  { %v911_v15 = vmul.f32 0.6931472, %v1194_v13 }
 0x705   :  { %913 = vst [vmem:[#allocation2 + $0x8] sm:$0xff] %v911_v15 }
 0x706   :  { %1226 = shalt.err (!%p1223_p9)
}
 0x707   :  { %925 = dma.vmem_to_hbm [thread:$0]  %s920_s2, 256, %s1588_s7, [#allocation3], %s1249_s27, %s1249_s27, %s1250_s28  }
 0x708   :  { %1235 = dma.done.wait [#allocation3], 256  }
 0x709   :  { %1236 = vsyncadd [#allocation3], 4294967040 }
 0x70a   :  { %1237 = dma.done.wait [#allocation5], 256  }
 0x70b   :  { %1238 = vsyncadd [#allocation5], 4294967040 }
 0x70c   :  { %944 = vsyncpa [#allocation3], 1 }
 0x70d   :  { %945 = vsyncpa [#allocation5], 1 }

</bundles_post_ra>
